<compile_context>
chip_gen: v6e
topology: v6e:2x2x1
jax: 0.10.0
libtpu: 0.0.40
codegen_flags: <defaults>
</compile_context>

<pallas_src>
import functools
from collections import Counter

import numpy as np

import jax
import jax.numpy as jnp
from jax import lax
from jax.experimental import pallas as pl
from jax.experimental.pallas import tpu as pltpu


def _make_kernel(R, M, K, alpha, is_norm):
    """R = rows per grid step (= B_tile * HW).  Everything captured here is a
    Python scalar, so nothing is closed over as a traced jnp constant."""

    def kernel(q_ref, keys_ref, vals_ref, tgt_ref, sidx_ref, loss_ref, nv_ref):
        q = q_ref[0]                                          # [R, C] f32
        if is_norm:
            sumsq = jnp.sum(q * q, axis=-1, keepdims=True)
            q = q * lax.rsqrt(jnp.maximum(sumsq, 1e-24))      # EUP rsqrt

        # Similarity matmul on the MXU: bf16 operands, f32 accumulation.
        sims = jnp.dot(q.astype(jnp.bfloat16), keys_ref[...],
                       preferred_element_type=jnp.float32)     # [R, M]

        m_vals = vals_ref[...]                                # [1, M] i32
        tgt = tgt_ref[0]                                      # [R, 1] i32
        sidx = sidx_ref[0]                                    # [R, 1] i32 (M if no safety slot)
        iota_m = lax.broadcasted_iota(jnp.int32, (1, M), 1)   # [1, M]

        # Hoisted out of the K-loop: which memory slots hold the target class,
        # and the sims masked to those "correct" slots.
        match = m_vals == tgt                                 # [R, M] bool
        pos_mat = jnp.where(match, sims, 0.0)                 # sim if correct else 0

        # Safety-positive slot (host-precomputed index): one select + reduce.
        has_safety = sidx < M                                 # [R, 1] bool
        safety_sim = jnp.sum(jnp.where(iota_m == sidx, sims, 0.0),
                             axis=-1, keepdims=True)          # [R, 1]

        # ---- iterative top-K: peel the max, record masked pos/neg products ----
        remaining = sims
        top1 = None
        nearest_val = None
        pos_run = None
        neg_run = None
        for k in range(K):
            cur_max = jnp.max(remaining, axis=-1, keepdims=True)           # [R,1]
            idx = jnp.min(jnp.where(remaining >= cur_max, iota_m, M),
                          axis=-1, keepdims=True)                          # first argmax
            onehot = iota_m == idx                                         # [R,M]
            pos_k = jnp.sum(jnp.where(onehot, pos_mat, 0.0),
                            axis=-1, keepdims=True)                        # sim_k if correct else 0
            neg_k = cur_max - pos_k                                        # sim_k if incorrect else 0
            if k == 0:
                top1 = cur_max
                nearest_val = jnp.sum(jnp.where(onehot, m_vals, 0),
                                      axis=-1, keepdims=True).astype(jnp.int32)
                pos_run, neg_run = pos_k, neg_k
            else:
                pos_run = jnp.maximum(pos_run, pos_k)
                neg_run = jnp.maximum(neg_run, neg_k)
            if k < K - 1:
                remaining = jnp.where(onehot, -1e30, remaining)

        # Safety column is always "correct": contributes safety_sim to the pos
        # products and 0 to the neg products (multiply-by-mask semantics of the
        # PyTorch reference).
        pos_s = jnp.maximum(pos_run, safety_sim)
        neg_s = jnp.maximum(neg_run, 0.0)
        loss_safe = jnp.maximum(neg_s - pos_s + alpha, 0.0)    # [R,1]
        loss_nosafe = jnp.maximum(top1 + alpha, 0.0)           # [R,1]
        loss_rows = jnp.where(has_safety, loss_safe, loss_nosafe)

        loss_ref[0] = loss_rows
        nv_ref[0] = nearest_val

    return kernel


def memory_k_forward(queries, targets, m_keys, m_vals, *, K, alpha=0.1,
                     is_norm=True, rows_per_step=128):
    """Forward of MemoryK (eval).  queries: [bs, C, H, W]; targets: [bs] int."""
    bs, C, H, W = queries.shape
    HW = H * W
    M, key_dim = m_keys.shape
    assert HW <= M and C == key_dim

    # --- batch tiling: B_tile images per grid step -> R rows per matmul -------
    B_tile = max(1, min(bs, rows_per_step // max(HW, 1)))
    num_tiles = -(-bs // B_tile)
    bs_pad = num_tiles * B_tile
    R = B_tile * HW

    q = jnp.transpose(queries.reshape(bs, C, HW), (0, 2, 1))   # [bs, HW, C]
    targets_i32 = targets.astype(jnp.int32)
    if bs_pad != bs:
        pad = bs_pad - bs
        q = jnp.concatenate([q, jnp.zeros((pad, HW, C), q.dtype)], axis=0)
        targets_i32 = jnp.concatenate(
            [targets_i32, jnp.full((pad,), -2, jnp.int32)], axis=0)
    q = q.reshape(num_tiles, R, C).astype(jnp.float32)

    # Host-precomputed safety slot per image (first slot whose value == target;
    # M when there is none) -- removes cross-lane searches from the kernel.
    mv = m_vals.astype(jnp.int32)
    match_bm = mv[None, :] == targets_i32[:, None]              # [bs_pad, M]
    sidx = jnp.where(jnp.any(match_bm, axis=-1),
                     jnp.argmax(match_bm, axis=-1), M).astype(jnp.int32)

    # Per-row columns (row = one spatial position of one image).
    tgt_rows = jnp.repeat(targets_i32, HW).reshape(num_tiles, R, 1)
    sidx_rows = jnp.repeat(sidx, HW).reshape(num_tiles, R, 1)

    keys_t = jnp.transpose(m_keys, (1, 0)).astype(jnp.bfloat16)  # [C, M] bf16
    vals2d = mv.reshape(1, M)                                    # [1, M] i32

    kernel = _make_kernel(R, M, int(K), float(alpha), bool(is_norm))

    # NOTE: keys_t / vals2d are grid-invariant (constant index_map), so Pallas
    # DMAs them once and re-uses the resident block across steps.
    loss_rows, nv = pl.pallas_call(
        kernel,
        grid=(num_tiles,),
        in_specs=[
            pl.BlockSpec((1, R, C), lambda t: (t, 0, 0)),
            pl.BlockSpec((C, M), lambda t: (0, 0)),
            pl.BlockSpec((1, M), lambda t: (0, 0)),
            pl.BlockSpec((1, R, 1), lambda t: (t, 0, 0)),
            pl.BlockSpec((1, R, 1), lambda t: (t, 0, 0)),
        ],
        out_specs=(
            pl.BlockSpec((1, R, 1), lambda t: (t, 0, 0)),
            pl.BlockSpec((1, R, 1), lambda t: (t, 0, 0)),
        ),
        out_shape=(
            jax.ShapeDtypeStruct((num_tiles, R, 1), jnp.float32),
            jax.ShapeDtypeStruct((num_tiles, R, 1), jnp.int32),
        ),
        compiler_params=pltpu.CompilerParams(
            dimension_semantics=("parallel",)),
    )(q, keys_t, vals2d, tgt_rows, sidx_rows)

    # ---- tiny glue in plain JAX ----------------------------------------------
    loss_rows = loss_rows.reshape(bs_pad, HW)[:bs]
    memory_loss = jnp.sum(jnp.mean(loss_rows, axis=-1))          # sum over batch

    nv = nv.reshape(bs_pad, HW)[:bs]
    # fetched_vals: mode (Counter.most_common) of nearest memory values per
    # image; first-occurrence tie-break matches Counter insertion order.
    eq = nv[:, :, None] == nv[:, None, :]                        # [bs, HW, HW]
    counts = eq.sum(-1)                                          # [bs, HW]
    pos = jnp.argmax(counts, axis=-1)                            # first max
    fetched_vals = jnp.take_along_axis(nv, pos[:, None], axis=1)[:, 0]
    return fetched_vals.astype(jnp.int32), memory_loss


# ----------------------- plain numpy reference ------------------------------
def _bf16_round(x):
    return np.asarray(jnp.asarray(np.asarray(x, np.float32))
                      .astype(jnp.bfloat16).astype(jnp.float32))


def reference_forward(queries, targets, m_keys, m_vals, K, alpha, is_norm):
    """NumPy re-implementation of MemoryK.forward (eval).  Uses the same
    bf16-rounded matmul operands as the kernel so results are comparable."""
    queries = np.asarray(queries, np.float32)
    targets = np.asarray(targets)
    m_keys_b = _bf16_round(m_keys)
    m_vals = np.asarray(m_vals, np.int64)
    bs, C, H, W = queries.shape
    HW = H * W
    q = queries.reshape(bs, C, HW).transpose(0, 2, 1)
    if is_norm:
        n = np.linalg.norm(q, axis=-1, keepdims=True)
        q = q / np.maximum(n, 1e-12)
    q = _bf16_round(q)
    fetched = np.zeros(bs, np.int32)
    total = np.float32(0.0)
    for i in range(bs):
        sims = (q[i] @ m_keys_b.T).astype(np.float32)
        order = np.argsort(-sims, axis=-1)
        nearest_val = m_vals[order[:, 0]]
        fetched[i] = Counter(nearest_val.tolist()).most_common(1)[0][0]
        topk_idxs = order[:, :K]
        topk_sims = np.take_along_axis(sims, topk_idxs, axis=-1)
        topk_vals = m_vals[topk_idxs]
        tgt = int(targets[i])
        safety = np.where(m_vals == tgt)[0]
        if len(safety) == 0:
            neg = topk_sims.max(-1)
            loss = np.maximum(neg + alpha, 0).mean()
        else:
            sidx = safety[0]
            ext_sims = np.concatenate([topk_sims, sims[:, [sidx]]], -1)
            ext_vals = np.concatenate(
                [topk_vals, np.full((HW, 1), tgt, np.int64)], -1)
            correct = ext_vals == tgt
            pos = (ext_sims * correct).max(-1)
            neg = (ext_sims * (~correct)).max(-1)
            loss = np.maximum(neg - pos + alpha, 0).mean()
        total += np.float32(loss)
    return fetched, total


if __name__ == "__main__":
    key = jax.random.PRNGKey(0)
    bs, C, H, W = 2, 32, 4, 4          # key_dim = C = 32, HW = 16
    M, K, alpha = 128, 4, 0.1          # mem_size = 128, top-K = 4

    k1, k2, k3 = jax.random.split(key, 3)
    queries = jax.random.normal(k1, (bs, C, H, W), dtype=jnp.float32)
    targets = jnp.array([1, 2], dtype=jnp.int32)

    # Buffers as in MemoryK.__init__: random keys, values all -1 (empty memory).
    m_keys = jax.random.normal(k2, (M, C), dtype=jnp.float32)
    m_vals_fresh = jnp.full((M,), -1, dtype=jnp.int32)
    # A populated-memory variant to also exercise the safety-positive branch.
    m_vals_pop = jax.random.randint(k3, (M,), -1, 4).astype(jnp.int32)

    fwd = functools.partial(memory_k_forward, K=K, alpha=alpha, is_norm=True)

    f1, l1 = fwd(queries, targets, m_keys, m_vals_fresh)
    f2, l2 = fwd(queries, targets, m_keys, m_vals_pop)
    jax.block_until_ready((f1, l1, f2, l2))

    for f, l, mv in [(f1, l1, m_vals_fresh), (f2, l2, m_vals_pop)]:
        rf, rl = reference_forward(np.asarray(queries), np.asarray(targets),
                                   np.asarray(m_keys), np.asarray(mv),
                                   K, alpha, True)
        assert np.array_equal(np.asarray(f), rf), (np.asarray(f), rf)
        assert abs(float(l) - float(rl)) < 2e-3, (float(l), float(rl))

    print("KERNEL_OK")
</pallas_src>

<mosaic_0001>
module attributes {stable_mosaic.version = 11 : i64} {
  func.func @kernel(%arg0: i32, %arg1: memref<1x32x32xf32, #tpu.memory_space<vmem>>, %arg2: memref<32x128xbf16, #tpu.memory_space<vmem>>, %arg3: memref<1x128xi32, #tpu.memory_space<vmem>>, %arg4: memref<1x32x1xi32, #tpu.memory_space<vmem>>, %arg5: memref<1x32x1xi32, #tpu.memory_space<vmem>>, %arg6: memref<1x32x1xf32, #tpu.memory_space<vmem>>, %arg7: memref<1x32x1xi32, #tpu.memory_space<vmem>>) attributes {dimension_semantics = [#tpu.dimension_semantics<parallel>], iteration_bounds = array<i64: 1>, scalar_prefetch = 0 : i64, scratch_operands = 0 : i64, tpu.core_type = #tpu.core_type<tc>, window_params = [{transform_indices = @transform_0, window_bounds = array<i64: 1, 32, 32>}, {pipeline_mode = #tpu.pipeline_mode<synchronous>, transform_indices = @transform_1, window_bounds = array<i64: 32, 128>}, {pipeline_mode = #tpu.pipeline_mode<synchronous>, transform_indices = @transform_2, window_bounds = array<i64: 1, 128>}, {transform_indices = @transform_3, window_bounds = array<i64: 1, 32, 1>}, {transform_indices = @transform_4, window_bounds = array<i64: 1, 32, 1>}, {transform_indices = @transform_5, window_bounds = array<i64: 1, 32, 1>}, {transform_indices = @transform_6, window_bounds = array<i64: 1, 32, 1>}]} {
    %c0 = arith.constant 0 : index
    %c0_0 = arith.constant 0 : index
    %c0_1 = arith.constant 0 : index
    %0 = vector.load %arg1[%c0, %c0_0, %c0_1] : memref<1x32x32xf32, #tpu.memory_space<vmem>>, vector<1x32x32xf32>
    %1 = vector.shape_cast %0 : vector<1x32x32xf32> to vector<32x32xf32>
    %2 = arith.mulf %1, %1 : vector<32x32xf32>
    %cst = arith.constant dense<0.000000e+00> : vector<32xf32>
    %3 = vector.multi_reduction <add>, %2, %cst [1] : vector<32x32xf32> to vector<32xf32>
    %4 = vector.shape_cast %3 : vector<32xf32> to vector<32x1xf32>
    %cst_2 = arith.constant 1.000000e-24 : f32
    %5 = vector.broadcast %cst_2 : f32 to vector<32x1xf32>
    %6 = arith.maximumf %4, %5 : vector<32x1xf32>
    %7 = math.rsqrt %6 : vector<32x1xf32>
    %8 = vector.broadcast %7 : vector<32x1xf32> to vector<32x32xf32>
    %9 = arith.mulf %1, %8 : vector<32x32xf32>
    %10 = arith.truncf %9 : vector<32x32xf32> to vector<32x32xbf16>
    %c0_3 = arith.constant 0 : index
    %c0_4 = arith.constant 0 : index
    %11 = vector.load %arg2[%c0_3, %c0_4] : memref<32x128xbf16, #tpu.memory_space<vmem>>, vector<32x128xbf16>
    %cst_5 = arith.constant dense<0.000000e+00> : vector<32x128xf32>
    %12 = tpu.matmul %10, %11, %cst_5 {dimension_numbers = #tpu.dot_dimension_numbers<[1], [0], [0], [1], [0, 0, 1, 1], [], []>} : vector<32x32xbf16>, vector<32x128xbf16>, vector<32x128xf32> -> vector<32x128xf32>
    %c0_6 = arith.constant 0 : index
    %c0_7 = arith.constant 0 : index
    %13 = vector.load %arg3[%c0_6, %c0_7] : memref<1x128xi32, #tpu.memory_space<vmem>>, vector<1x128xi32>
    %c0_8 = arith.constant 0 : index
    %c0_9 = arith.constant 0 : index
    %c0_10 = arith.constant 0 : index
    %14 = vector.load %arg4[%c0_8, %c0_9, %c0_10] : memref<1x32x1xi32, #tpu.memory_space<vmem>>, vector<1x32x1xi32>
    %15 = vector.shape_cast %14 : vector<1x32x1xi32> to vector<32x1xi32>
    %c0_11 = arith.constant 0 : index
    %c0_12 = arith.constant 0 : index
    %c0_13 = arith.constant 0 : index
    %16 = vector.load %arg5[%c0_11, %c0_12, %c0_13] : memref<1x32x1xi32, #tpu.memory_space<vmem>>, vector<1x32x1xi32>
    %17 = vector.shape_cast %16 : vector<1x32x1xi32> to vector<32x1xi32>
    %18 = tpu.iota {dimensions = array<i32: 1>} : vector<1x128xi32>
    %19 = vector.broadcast %13 : vector<1x128xi32> to vector<32x128xi32>
    %20 = vector.broadcast %15 : vector<32x1xi32> to vector<32x128xi32>
    %21 = arith.cmpi eq, %19, %20 : vector<32x128xi32>
    %cst_14 = arith.constant 0.000000e+00 : f32
    %22 = vector.broadcast %cst_14 : f32 to vector<32x128xf32>
    %23 = arith.select %21, %12, %22 : vector<32x128xi1>, vector<32x128xf32>
    %c128_i32 = arith.constant 128 : i32
    %24 = vector.broadcast %c128_i32 : i32 to vector<32x1xi32>
    %25 = arith.cmpi slt, %17, %24 : vector<32x1xi32>
    %26 = vector.broadcast %18 : vector<1x128xi32> to vector<32x128xi32>
    %27 = vector.broadcast %17 : vector<32x1xi32> to vector<32x128xi32>
    %28 = arith.cmpi eq, %26, %27 : vector<32x128xi32>
    %cst_15 = arith.constant 0.000000e+00 : f32
    %29 = vector.broadcast %cst_15 : f32 to vector<32x128xf32>
    %30 = arith.select %28, %12, %29 : vector<32x128xi1>, vector<32x128xf32>
    %cst_16 = arith.constant dense<0.000000e+00> : vector<32xf32>
    %31 = vector.multi_reduction <add>, %30, %cst_16 [1] : vector<32x128xf32> to vector<32xf32>
    %32 = vector.shape_cast %31 : vector<32xf32> to vector<32x1xf32>
    %cst_17 = arith.constant dense<0xFF800000> : vector<32xf32>
    %33 = vector.multi_reduction <maximumf>, %12, %cst_17 [1] : vector<32x128xf32> to vector<32xf32>
    %34 = vector.shape_cast %33 : vector<32xf32> to vector<32x1xf32>
    %35 = vector.broadcast %34 : vector<32x1xf32> to vector<32x128xf32>
    %36 = arith.cmpf oge, %12, %35 : vector<32x128xf32>
    %c128_i32_18 = arith.constant 128 : i32
    %37 = vector.shape_cast %18 : vector<1x128xi32> to vector<1x128xi32>
    %38 = vector.broadcast %37 : vector<1x128xi32> to vector<32x128xi32>
    %39 = vector.broadcast %c128_i32_18 : i32 to vector<32x128xi32>
    %40 = arith.select %36, %38, %39 : vector<32x128xi1>, vector<32x128xi32>
    %cst_19 = arith.constant dense<2147483647> : vector<32xi32>
    %41 = vector.multi_reduction <minsi>, %40, %cst_19 [1] : vector<32x128xi32> to vector<32xi32>
    %42 = vector.shape_cast %41 : vector<32xi32> to vector<32x1xi32>
    %43 = vector.broadcast %18 : vector<1x128xi32> to vector<32x128xi32>
    %44 = vector.broadcast %42 : vector<32x1xi32> to vector<32x128xi32>
    %45 = arith.cmpi eq, %43, %44 : vector<32x128xi32>
    %cst_20 = arith.constant 0.000000e+00 : f32
    %46 = vector.broadcast %cst_20 : f32 to vector<32x128xf32>
    %47 = arith.select %45, %23, %46 : vector<32x128xi1>, vector<32x128xf32>
    %cst_21 = arith.constant dense<0.000000e+00> : vector<32xf32>
    %48 = vector.multi_reduction <add>, %47, %cst_21 [1] : vector<32x128xf32> to vector<32xf32>
    %49 = vector.shape_cast %48 : vector<32xf32> to vector<32x1xf32>
    %50 = arith.subf %34, %49 : vector<32x1xf32>
    %c0_i32 = arith.constant 0 : i32
    %51 = vector.shape_cast %13 : vector<1x128xi32> to vector<1x128xi32>
    %52 = vector.broadcast %51 : vector<1x128xi32> to vector<32x128xi32>
    %53 = vector.broadcast %c0_i32 : i32 to vector<32x128xi32>
    %54 = arith.select %45, %52, %53 : vector<32x128xi1>, vector<32x128xi32>
    %cst_22 = arith.constant dense<0> : vector<32xi32>
    %55 = vector.multi_reduction <add>, %54, %cst_22 [1] : vector<32x128xi32> to vector<32xi32>
    %56 = vector.shape_cast %55 : vector<32xi32> to vector<32x1xi32>
    %cst_23 = arith.constant -1.000000e+30 : f32
    %57 = vector.broadcast %cst_23 : f32 to vector<32x128xf32>
    %58 = arith.select %45, %57, %12 : vector<32x128xi1>, vector<32x128xf32>
    %cst_24 = arith.constant dense<0xFF800000> : vector<32xf32>
    %59 = vector.multi_reduction <maximumf>, %58, %cst_24 [1] : vector<32x128xf32> to vector<32xf32>
    %60 = vector.shape_cast %59 : vector<32xf32> to vector<32x1xf32>
    %61 = vector.broadcast %60 : vector<32x1xf32> to vector<32x128xf32>
    %62 = arith.cmpf oge, %58, %61 : vector<32x128xf32>
    %c128_i32_25 = arith.constant 128 : i32
    %63 = vector.shape_cast %18 : vector<1x128xi32> to vector<1x128xi32>
    %64 = vector.broadcast %63 : vector<1x128xi32> to vector<32x128xi32>
    %65 = vector.broadcast %c128_i32_25 : i32 to vector<32x128xi32>
    %66 = arith.select %62, %64, %65 : vector<32x128xi1>, vector<32x128xi32>
    %cst_26 = arith.constant dense<2147483647> : vector<32xi32>
    %67 = vector.multi_reduction <minsi>, %66, %cst_26 [1] : vector<32x128xi32> to vector<32xi32>
    %68 = vector.shape_cast %67 : vector<32xi32> to vector<32x1xi32>
    %69 = vector.broadcast %18 : vector<1x128xi32> to vector<32x128xi32>
    %70 = vector.broadcast %68 : vector<32x1xi32> to vector<32x128xi32>
    %71 = arith.cmpi eq, %69, %70 : vector<32x128xi32>
    %cst_27 = arith.constant 0.000000e+00 : f32
    %72 = vector.broadcast %cst_27 : f32 to vector<32x128xf32>
    %73 = arith.select %71, %23, %72 : vector<32x128xi1>, vector<32x128xf32>
    %cst_28 = arith.constant dense<0.000000e+00> : vector<32xf32>
    %74 = vector.multi_reduction <add>, %73, %cst_28 [1] : vector<32x128xf32> to vector<32xf32>
    %75 = vector.shape_cast %74 : vector<32xf32> to vector<32x1xf32>
    %76 = arith.subf %60, %75 : vector<32x1xf32>
    %77 = arith.maximumf %49, %75 : vector<32x1xf32>
    %78 = arith.maximumf %50, %76 : vector<32x1xf32>
    %cst_29 = arith.constant -1.000000e+30 : f32
    %79 = vector.broadcast %cst_29 : f32 to vector<32x128xf32>
    %80 = arith.select %71, %79, %58 : vector<32x128xi1>, vector<32x128xf32>
    %cst_30 = arith.constant dense<0xFF800000> : vector<32xf32>
    %81 = vector.multi_reduction <maximumf>, %80, %cst_30 [1] : vector<32x128xf32> to vector<32xf32>
    %82 = vector.shape_cast %81 : vector<32xf32> to vector<32x1xf32>
    %83 = vector.broadcast %82 : vector<32x1xf32> to vector<32x128xf32>
    %84 = arith.cmpf oge, %80, %83 : vector<32x128xf32>
    %c128_i32_31 = arith.constant 128 : i32
    %85 = vector.shape_cast %18 : vector<1x128xi32> to vector<1x128xi32>
    %86 = vector.broadcast %85 : vector<1x128xi32> to vector<32x128xi32>
    %87 = vector.broadcast %c128_i32_31 : i32 to vector<32x128xi32>
    %88 = arith.select %84, %86, %87 : vector<32x128xi1>, vector<32x128xi32>
    %cst_32 = arith.constant dense<2147483647> : vector<32xi32>
    %89 = vector.multi_reduction <minsi>, %88, %cst_32 [1] : vector<32x128xi32> to vector<32xi32>
    %90 = vector.shape_cast %89 : vector<32xi32> to vector<32x1xi32>
    %91 = vector.broadcast %18 : vector<1x128xi32> to vector<32x128xi32>
    %92 = vector.broadcast %90 : vector<32x1xi32> to vector<32x128xi32>
    %93 = arith.cmpi eq, %91, %92 : vector<32x128xi32>
    %cst_33 = arith.constant 0.000000e+00 : f32
    %94 = vector.broadcast %cst_33 : f32 to vector<32x128xf32>
    %95 = arith.select %93, %23, %94 : vector<32x128xi1>, vector<32x128xf32>
    %cst_34 = arith.constant dense<0.000000e+00> : vector<32xf32>
    %96 = vector.multi_reduction <add>, %95, %cst_34 [1] : vector<32x128xf32> to vector<32xf32>
    %97 = vector.shape_cast %96 : vector<32xf32> to vector<32x1xf32>
    %98 = arith.subf %82, %97 : vector<32x1xf32>
    %99 = arith.maximumf %77, %97 : vector<32x1xf32>
    %100 = arith.maximumf %78, %98 : vector<32x1xf32>
    %cst_35 = arith.constant -1.000000e+30 : f32
    %101 = vector.broadcast %cst_35 : f32 to vector<32x128xf32>
    %102 = arith.select %93, %101, %80 : vector<32x128xi1>, vector<32x128xf32>
    %cst_36 = arith.constant dense<0xFF800000> : vector<32xf32>
    %103 = vector.multi_reduction <maximumf>, %102, %cst_36 [1] : vector<32x128xf32> to vector<32xf32>
    %104 = vector.shape_cast %103 : vector<32xf32> to vector<32x1xf32>
    %105 = vector.broadcast %104 : vector<32x1xf32> to vector<32x128xf32>
    %106 = arith.cmpf oge, %102, %105 : vector<32x128xf32>
    %c128_i32_37 = arith.constant 128 : i32
    %107 = vector.shape_cast %18 : vector<1x128xi32> to vector<1x128xi32>
    %108 = vector.broadcast %107 : vector<1x128xi32> to vector<32x128xi32>
    %109 = vector.broadcast %c128_i32_37 : i32 to vector<32x128xi32>
    %110 = arith.select %106, %108, %109 : vector<32x128xi1>, vector<32x128xi32>
    %cst_38 = arith.constant dense<2147483647> : vector<32xi32>
    %111 = vector.multi_reduction <minsi>, %110, %cst_38 [1] : vector<32x128xi32> to vector<32xi32>
    %112 = vector.shape_cast %111 : vector<32xi32> to vector<32x1xi32>
    %113 = vector.broadcast %18 : vector<1x128xi32> to vector<32x128xi32>
    %114 = vector.broadcast %112 : vector<32x1xi32> to vector<32x128xi32>
    %115 = arith.cmpi eq, %113, %114 : vector<32x128xi32>
    %cst_39 = arith.constant 0.000000e+00 : f32
    %116 = vector.broadcast %cst_39 : f32 to vector<32x128xf32>
    %117 = arith.select %115, %23, %116 : vector<32x128xi1>, vector<32x128xf32>
    %cst_40 = arith.constant dense<0.000000e+00> : vector<32xf32>
    %118 = vector.multi_reduction <add>, %117, %cst_40 [1] : vector<32x128xf32> to vector<32xf32>
    %119 = vector.shape_cast %118 : vector<32xf32> to vector<32x1xf32>
    %120 = arith.subf %104, %119 : vector<32x1xf32>
    %121 = arith.maximumf %99, %119 : vector<32x1xf32>
    %122 = arith.maximumf %100, %120 : vector<32x1xf32>
    %123 = arith.maximumf %121, %32 : vector<32x1xf32>
    %cst_41 = arith.constant 0.000000e+00 : f32
    %124 = vector.broadcast %cst_41 : f32 to vector<32x1xf32>
    %125 = arith.maximumf %122, %124 : vector<32x1xf32>
    %126 = arith.subf %125, %123 : vector<32x1xf32>
    %cst_42 = arith.constant 1.000000e-01 : f32
    %127 = vector.broadcast %cst_42 : f32 to vector<32x1xf32>
    %128 = arith.addf %126, %127 : vector<32x1xf32>
    %cst_43 = arith.constant 0.000000e+00 : f32
    %129 = vector.broadcast %cst_43 : f32 to vector<32x1xf32>
    %130 = arith.maximumf %128, %129 : vector<32x1xf32>
    %cst_44 = arith.constant 1.000000e-01 : f32
    %131 = vector.broadcast %cst_44 : f32 to vector<32x1xf32>
    %132 = arith.addf %34, %131 : vector<32x1xf32>
    %cst_45 = arith.constant 0.000000e+00 : f32
    %133 = vector.broadcast %cst_45 : f32 to vector<32x1xf32>
    %134 = arith.maximumf %132, %133 : vector<32x1xf32>
    %135 = arith.select %25, %130, %134 : vector<32x1xi1>, vector<32x1xf32>
    %c0_46 = arith.constant 0 : index
    %c0_47 = arith.constant 0 : index
    %c0_48 = arith.constant 0 : index
    %136 = vector.load %arg6[%c0_46, %c0_47, %c0_48] : memref<1x32x1xf32, #tpu.memory_space<vmem>>, vector<1x32x1xf32>
    %137 = vector.shape_cast %136 : vector<1x32x1xf32> to vector<32x1xf32>
    %138 = vector.shape_cast %135 : vector<32x1xf32> to vector<1x32x1xf32>
    tpu.vector_store %arg6[%c0_46, %c0_47, %c0_48], %138 {strides = array<i32>} : memref<1x32x1xf32, #tpu.memory_space<vmem>>, vector<1x32x1xf32>,
    %c0_49 = arith.constant 0 : index
    %c0_50 = arith.constant 0 : index
    %c0_51 = arith.constant 0 : index
    %139 = vector.load %arg7[%c0_49, %c0_50, %c0_51] : memref<1x32x1xi32, #tpu.memory_space<vmem>>, vector<1x32x1xi32>
    %140 = vector.shape_cast %139 : vector<1x32x1xi32> to vector<32x1xi32>
    %141 = vector.shape_cast %56 : vector<32x1xi32> to vector<1x32x1xi32>
    tpu.vector_store %arg7[%c0_49, %c0_50, %c0_51], %141 {strides = array<i32>} : memref<1x32x1xi32, #tpu.memory_space<vmem>>, vector<1x32x1xi32>,
    return
  }
  func.func @transform_0(%arg0: i32) -> (i32, i32, i32) {
    %c0_i32 = arith.constant 0 : i32
    %c0_i32_0 = arith.constant 0 : i32
    %c0_i32_1 = arith.constant 0 : i32
    return %arg0, %c0_i32, %c0_i32_0 : i32, i32, i32
  }
  func.func @transform_1(%arg0: i32) -> (i32, i32) {
    %c0_i32 = arith.constant 0 : i32
    %c0_i32_0 = arith.constant 0 : i32
    %c0_i32_1 = arith.constant 0 : i32
    return %c0_i32, %c0_i32_0 : i32, i32
  }
  func.func @transform_2(%arg0: i32) -> (i32, i32) {
    %c0_i32 = arith.constant 0 : i32
    %c0_i32_0 = arith.constant 0 : i32
    %c0_i32_1 = arith.constant 0 : i32
    return %c0_i32, %c0_i32_0 : i32, i32
  }
  func.func @transform_3(%arg0: i32) -> (i32, i32, i32) {
    %c0_i32 = arith.constant 0 : i32
    %c0_i32_0 = arith.constant 0 : i32
    %c0_i32_1 = arith.constant 0 : i32
    return %arg0, %c0_i32, %c0_i32_0 : i32, i32, i32
  }
  func.func @transform_4(%arg0: i32) -> (i32, i32, i32) {
    %c0_i32 = arith.constant 0 : i32
    %c0_i32_0 = arith.constant 0 : i32
    %c0_i32_1 = arith.constant 0 : i32
    return %arg0, %c0_i32, %c0_i32_0 : i32, i32, i32
  }
  func.func @transform_5(%arg0: i32) -> (i32, i32, i32) {
    %c0_i32 = arith.constant 0 : i32
    %c0_i32_0 = arith.constant 0 : i32
    %c0_i32_1 = arith.constant 0 : i32
    return %arg0, %c0_i32, %c0_i32_0 : i32, i32, i32
  }
  func.func @transform_6(%arg0: i32) -> (i32, i32, i32) {
    %c0_i32 = arith.constant 0 : i32
    %c0_i32_0 = arith.constant 0 : i32
    %c0_i32_1 = arith.constant 0 : i32
    return %arg0, %c0_i32, %c0_i32_0 : i32, i32, i32
  }
}

</mosaic_0001>

<bundles_post_ra>
// kernel: tpu_custom_call.1
= control target key start
LH: loop header
LB: loop body
LE: loop exit
PB: predicated region body
PF: predicated region fallthrough
CT: control target
= control target key end

     0   :  { %vm31_vm0 = vcmask 261120   ;;  %v138_v36 = vlaneseq  ;;  %s1233_s0 = inlined_call_operand.vmem [shape: f32[1,32,32], index: 0, kind: input, shape index: {}]   ;;  %s1234_s1 = inlined_call_operand.vmem [shape: bf16[32,128], index: 1, kind: input, shape index: {}]   ;;  %s1235_s3 = inlined_call_operand.vmem [shape: s32[1,32,1], index: 3, kind: input, shape index: {}]   ;;  %s1236_s4 = inlined_call_operand.vmem [shape: s32[1,32,1], index: 4, kind: input, shape index: {}]   ;;  %s1237_s2 = inlined_call_operand.vmem [shape: s32[1,128], index: 2, kind: input, shape index: {}]   ;;  %s1238_s5 = inlined_call_operand.vmem [shape: f32[1,32,1], index: 5, kind: output, shape index: {0}]   ;;  %s1239_s6 = inlined_call_operand.vmem [shape: s32[1,32,1], index: 6, kind: output, shape index: {1}]  }
   0x1   :  { %v25_v0 = vld [vmem:[%s1233_s0 + $0x10] sm:$0xff]  ;;  %v23_v1 = vld [vmem:[%s1233_s0] sm:$0xff]  ;;  %v26_v2 = vld [vmem:[%s1233_s0 + $0x18] sm:$0xff] }
   0x2   :  { %v29_v3 = vmul.f32 %v25_v0, %v25_v0  ;;  %v27_v4 = vmul.f32 %v23_v1, %v23_v1  ;;  %v30_v5 = vmul.f32 %v26_v2, %v26_v2  ;;  %v24_v6 = vld [vmem:[%s1233_s0 + $0x8] sm:$0xff]  ;;  %v722_v13 = vld [vmem:[%s1234_s1] sm:$0xff]   ;;  %v803_v37 = vand.u32 127, %v138_v36 }
   0x3   :  { %v28_v7 = vmul.f32 %v24_v6, %v24_v6  ;;  %v721_v12 = vld [vmem:[%s1234_s1 + $0x8] sm:$0xff]  }
   0x4   :  { %v38_v8 = vsel %vm31_vm0, %v29_v3, 0.0  ;;  %v32_v9 = vsel %vm31_vm0, %v27_v4, 0.0  ;;  %v41_v10 = vsel %vm31_vm0, %v30_v5, 0.0  ;;  %710 = vmatprep.subr.bf16.mxu0 %v721_v12 }
   0x5   :  { %39 = vadd.xlane.f32.xlu1 %v38_v8  ;;  %33 = vadd.xlane.f32.xlu0 %v32_v9  ;;  %v35_v11 = vsel %vm31_vm0, %v28_v7, 0.0 }
   0x6   :  { %711 = vmatpush3.bf16.msra.mxu0 %v721_v12 }
   0x7   :  { %712 = vmatprep.subr.bf16.mxu0 %v722_v13 }
   0x9   :  { %42 = vadd.xlane.f32.xlu1 %v41_v10  ;;  %36 = vadd.xlane.f32.xlu0 %v35_v11 }
   0xa   :  { %713 = vmatpush3.bf16.msra.mxu0 %v722_v13 }
  0x8e   :  { %v40_v14 = vpop.xlane.xlu1 %39  ;;  %v34_v15 = vpop.xlane.xlu0 %33 }
  0x8f   :  { %v46_v16 = vmax.f32 %v40_v14, 1e-24  ;;  %v44_v17 = vmax.f32 %v34_v15, 1e-24 }
  0x91   :  { %723 = vrsqrt.f32 %v46_v16 }
  0x92   :  { %v43_v18 = vpop.xlane.xlu1 %42  ;;  %v37_v19 = vpop.xlane.xlu0 %36  ;;  %725 = vrsqrt.f32 %v44_v17 }
  0x93   :  { %v47_v20 = vmax.f32 %v43_v18, 1e-24  ;;  %v45_v21 = vmax.f32 %v37_v19, 1e-24 }
  0x95   :  { %727 = vrsqrt.f32 %v47_v20 }
  0x96   :  { %729 = vrsqrt.f32 %v45_v21 }
  0x9e   :  { %v724_v22 = vpop.eup %723 }
  0x9f   :  { %v726_v23 = vpop.eup %725  ;;  %v54_v26 = vmul.f32 %v724_v22, %v25_v0 }
  0xa0   :  { %v52_v28 = vmul.f32 %v726_v23, %v23_v1 }
  0xa2   :  { %v728_v24 = vpop.eup %727 }
  0xa3   :  { %v730_v25 = vpop.eup %729  ;;  %v55_v27 = vmul.f32 %v728_v24, %v26_v2 }
  0xa4   :  { %v53_v29 = vmul.f32 %v730_v25, %v24_v6 }
  0xa5   :  { %v57_v30 = vpack.c.bf16 %v55_v27, %v54_v26 }
  0xa6   :  { %v56_v31 = vpack.c.bf16 %v53_v29, %v52_v28 }
  0xa8   :  { %714 = vmatprep.mubr.msk.bf16.mxu0 %vm31_vm0, %v56_v31 }
  0xa9   :  { %715 = vmatmul.mubr.msk.bf16.vlgmr.msra.gmra.mxu0 %vm31_vm0, %v57_v30 }
 0x169   :  { %v791_v32 = vpop.f32.mrf.mxu0 }
 0x16b   :  { %v793_v33 = vpop.f32.mrf.mxu0 }
 0x16c   :  { %196 = vmax.xlane.f32.xlu0 %v793_v33 }
 0x16d   :  { %v796_v34 = vpop.f32.mrf.mxu0 }
 0x16f   :  { %v798_v35 = vpop.f32.mrf.mxu0 }
 0x170   :  { %200 = vmax.xlane.f32.xlu0 %v791_v32  ;;  %198 = vmax.xlane.f32.xlu1 %v798_v35 }
 0x174   :  { %202 = vmax.xlane.f32.xlu1 %v796_v34 }
 0x1f5   :  { %v805_v38 = vpop.xlane.xlu0 %196 }
 0x1f6   :  { %vm204_vm1 = vcmp.ge.f32.partialorder %v793_v33, %v805_v38 }
 0x1f7   :  { %v208_v39 = vsel %vm204_vm1, %v803_v37, 128 }
 0x1f8   :  { %v213_v40 = vshra.s32 %v208_v39, 16  ;;  %v212_v54 = vand.u32 65535, %v208_v39 }
 0x1f9   :  { %v810_v41 = vpop.xlane.xlu0 %200  ;;  %v812_v42 = vpop.xlane.xlu1 %198 }
 0x1fa   :  { %vm206_vm2 = vcmp.ge.f32.partialorder %v791_v32, %v810_v41  ;;  %vm205_vm3 = vcmp.ge.f32.partialorder %v798_v35, %v812_v42  ;;  %v215_v43 = vcvt.s32.f32 %v213_v40  ;;  %v214_v57 = vcvt.s32.f32 %v212_v54 }
 0x1fb   :  { %v210_v44 = vsel %vm206_vm2, %v803_v37, 128  ;;  %v209_v45 = vsel %vm205_vm3, %v803_v37, 128 }
 0x1fc   :  { %v241_v46 = vshra.s32 %v210_v44, 16  ;;  %v227_v47 = vshra.s32 %v209_v45, 16  ;;  %216 = vmin.xlane.f32.xlu0 %v215_v43  ;;  %v226_v55 = vand.u32 65535, %v209_v45  ;;  %v240_v58 = vand.u32 65535, %v210_v44 }
 0x1fd   :  { %v820_v48 = vpop.xlane.xlu1 %202 }
 0x1fe   :  { %vm207_vm4 = vcmp.ge.f32.partialorder %v796_v34, %v820_v48  ;;  %v243_v49 = vcvt.s32.f32 %v241_v46  ;;  %v229_v50 = vcvt.s32.f32 %v227_v47  ;;  %v228_v61 = vcvt.s32.f32 %v226_v55 }
 0x1ff   :  { %v211_v51 = vsel %vm207_vm4, %v803_v37, 128  ;;  %v242_v0 = vcvt.s32.f32 %v240_v58 }
 0x200   :  { %230 = vmin.xlane.f32.xlu1 %v229_v50  ;;  %v255_v52 = vshra.s32 %v211_v51, 16  ;;  %244 = vmin.xlane.f32.xlu0 %v243_v49  ;;  %v254_v62 = vand.u32 65535, %v211_v51 }
 0x202   :  { %v257_v53 = vcvt.s32.f32 %v255_v52  ;;  %v256_v4 = vcvt.s32.f32 %v254_v62 }
 0x204   :  { %258 = vmin.xlane.f32.xlu1 %v257_v53 }
 0x285   :  { %v217_v56 = vpop.xlane.xlu0 %216 }
 0x286   :  { %vm218_vm5 = vcmp.eq.f32.partialorder %v215_v43, %v217_v56  ;;  %v223_v6 = vcvt.f32.s32 %v217_v56 }
 0x287   :  { %v219_v59 = vsel %vm218_vm5, %v214_v57, inf }
 0x288   :  { %220 = vmin.xlane.f32.xlu0 %v219_v59  ;;  %v224_v9 = vshll.u32 %v223_v6, 16 }
 0x289   :  { %v231_v60 = vpop.xlane.xlu1 %230  ;;  %v245_v63 = vpop.xlane.xlu0 %244 }
 0x28a   :  { %vm232_vm6 = vcmp.eq.f32.partialorder %v229_v50, %v231_v60  ;;  %vm246_vm7 = vcmp.eq.f32.partialorder %v243_v49, %v245_v63  ;;  %v237_v7 = vcvt.f32.s32 %v231_v60  ;;  %v251_v10 = vcvt.f32.s32 %v245_v63 }
 0x28b   :  { %v233_v1 = vsel %vm232_vm6, %v228_v61, inf  ;;  %v247_v2 = vsel %vm246_vm7, %v242_v0, inf }
 0x28c   :  { %234 = vmin.xlane.f32.xlu1 %v233_v1  ;;  %248 = vmin.xlane.f32.xlu0 %v247_v2  ;;  %v238_v14 = vshll.u32 %v237_v7, 16  ;;  %v252_v18 = vshll.u32 %v251_v10, 16 }
 0x28d   :  { %v259_v3 = vpop.xlane.xlu1 %258 }
 0x28e   :  { %vm260_vm8 = vcmp.eq.f32.partialorder %v257_v53, %v259_v3  ;;  %v265_v15 = vcvt.f32.s32 %v259_v3 }
 0x28f   :  { %v261_v5 = vsel %vm260_vm8, %v256_v4, inf }
 0x290   :  { %262 = vmin.xlane.f32.xlu1 %v261_v5  ;;  %v266_v24 = vshll.u32 %v265_v15, 16 }
 0x311   :  { %v221_v8 = vpop.xlane.xlu0 %220 }
 0x312   :  { %v222_v11 = vcvt.f32.s32 %v221_v8 }
 0x314   :  { %v825_v12 = vadd.s32 %v224_v9, %v222_v11 }
 0x315   :  { %v235_v13 = vpop.xlane.xlu1 %234  ;;  %v249_v16 = vpop.xlane.xlu0 %248 }
 0x316   :  { %v236_v17 = vcvt.f32.s32 %v235_v13  ;;  %v250_v19 = vcvt.f32.s32 %v249_v16  ;;  %vm268_vm9 = vcmp.eq.s32.totalorder %v803_v37, %v825_v12 }
 0x317   :  { %v835_v21 = vsel %vm268_vm9, -1e+30, %v793_v33 }
 0x318   :  { %v829_v20 = vadd.s32 %v238_v14, %v236_v17  ;;  %v837_v22 = vadd.s32 %v252_v18, %v250_v19  ;;  %344 = vmax.xlane.f32.xlu0 %v835_v21 }
 0x319   :  { %v263_v23 = vpop.xlane.xlu1 %262 }
 0x31a   :  { %v264_v25 = vcvt.f32.s32 %v263_v23  ;;  %vm269_vm10 = vcmp.eq.s32.totalorder %v803_v37, %v829_v20  ;;  %vm270_vm11 = vcmp.eq.s32.totalorder %v803_v37, %v837_v22 }
 0x31b   :  { %v848_v26 = vsel %vm269_vm10, -1e+30, %v798_v35  ;;  %v856_v28 = vsel %vm270_vm11, -1e+30, %v791_v32 }
 0x31c   :  { %v850_v27 = vadd.s32 %v266_v24, %v264_v25  ;;  %346 = vmax.xlane.f32.xlu1 %v848_v26  ;;  %348 = vmax.xlane.f32.xlu0 %v856_v28 }
 0x31e   :  { %vm271_vm12 = vcmp.eq.s32.totalorder %v803_v37, %v850_v27 }
 0x31f   :  { %v866_v29 = vsel %vm271_vm12, -1e+30, %v796_v34 }
 0x320   :  { %350 = vmax.xlane.f32.xlu1 %v866_v29 }
 0x3a1   :  { %v869_v30 = vpop.xlane.xlu0 %344 }
 0x3a2   :  { %vm352_vm13 = vcmp.ge.f32.partialorder %v835_v21, %v869_v30 }
 0x3a3   :  { %v356_v31 = vsel %vm352_vm13, %v803_v37, 128 }
 0x3a4   :  { %v361_v39 = vshra.s32 %v356_v31, 16  ;;  %v360_v55 = vand.u32 65535, %v356_v31 }
 0x3a5   :  { %v874_v36 = vpop.xlane.xlu1 %346  ;;  %v876_v40 = vpop.xlane.xlu0 %348 }
 0x3a6   :  { %vm353_vm14 = vcmp.ge.f32.partialorder %v848_v26, %v874_v36  ;;  %vm354_vm15 = vcmp.ge.f32.partialorder %v856_v28, %v876_v40  ;;  %v363_v44 = vcvt.s32.f32 %v361_v39  ;;  %v362_v58 = vcvt.s32.f32 %v360_v55 }
 0x3a7   :  { %v357_v43 = vsel %vm353_vm14, %v803_v37, 128  ;;  %v358_v45 = vsel %vm354_vm15, %v803_v37, 128 }
 0x3a8   :  { %v375_v46 = vshra.s32 %v357_v43, 16  ;;  %364 = vmin.xlane.f32.xlu0 %v363_v44  ;;  %v389_v49 = vshra.s32 %v358_v45, 16  ;;  %v374_v56 = vand.u32 65535, %v357_v43  ;;  %v388_v59 = vand.u32 65535, %v358_v45 }
 0x3a9   :  { %v884_v47 = vpop.xlane.xlu1 %350 }
 0x3aa   :  { %vm355_vm0 = vcmp.ge.f32.partialorder %v866_v29, %v884_v47  ;;  %v377_v50 = vcvt.s32.f32 %v375_v46  ;;  %v391_v52 = vcvt.s32.f32 %v389_v49  ;;  %v376_v62 = vcvt.s32.f32 %v374_v56 }
 0x3ab   :  { %v359_v51 = vsel %vm355_vm0, %v803_v37, 128  ;;  %v390_v1 = vcvt.s32.f32 %v388_v59 }
 0x3ac   :  { %378 = vmin.xlane.f32.xlu1 %v377_v50  ;;  %v403_v53 = vshra.s32 %v359_v51, 16  ;;  %392 = vmin.xlane.f32.xlu0 %v391_v52  ;;  %v402_v63 = vand.u32 65535, %v359_v51 }
 0x3ae   :  { %v405_v54 = vcvt.s32.f32 %v403_v53  ;;  %v404_v5 = vcvt.s32.f32 %v402_v63 }
 0x3b0   :  { %406 = vmin.xlane.f32.xlu1 %v405_v54 }
 0x431   :  { %v365_v57 = vpop.xlane.xlu0 %364 }
 0x432   :  { %vm366_vm1 = vcmp.eq.f32.partialorder %v363_v44, %v365_v57  ;;  %v371_v7 = vcvt.f32.s32 %v365_v57 }
 0x433   :  { %v367_v60 = vsel %vm366_vm1, %v362_v58, inf }
 0x434   :  { %368 = vmin.xlane.f32.xlu0 %v367_v60  ;;  %v372_v10 = vshll.u32 %v371_v7, 16 }
 0x435   :  { %v379_v61 = vpop.xlane.xlu1 %378  ;;  %v393_v0 = vpop.xlane.xlu0 %392 }
 0x436   :  { %vm380_vm2 = vcmp.eq.f32.partialorder %v377_v50, %v379_v61  ;;  %vm394_vm3 = vcmp.eq.f32.partialorder %v391_v52, %v393_v0  ;;  %v385_v8 = vcvt.f32.s32 %v379_v61  ;;  %v399_v11 = vcvt.f32.s32 %v393_v0 }
 0x437   :  { %v381_v2 = vsel %vm380_vm2, %v376_v62, inf  ;;  %v395_v3 = vsel %vm394_vm3, %v390_v1, inf }
 0x438   :  { %382 = vmin.xlane.f32.xlu1 %v381_v2  ;;  %396 = vmin.xlane.f32.xlu0 %v395_v3  ;;  %v386_v16 = vshll.u32 %v385_v8, 16  ;;  %v400_v23 = vshll.u32 %v399_v11, 16 }
 0x439   :  { %v407_v4 = vpop.xlane.xlu1 %406 }
 0x43a   :  { %vm408_vm4 = vcmp.eq.f32.partialorder %v405_v54, %v407_v4  ;;  %v413_v17 = vcvt.f32.s32 %v407_v4 }
 0x43b   :  { %v409_v6 = vsel %vm408_vm4, %v404_v5, inf }
 0x43c   :  { %410 = vmin.xlane.f32.xlu1 %v409_v6  ;;  %v414_v44 = vshll.u32 %v413_v17, 16 }
 0x4bd   :  { %v369_v9 = vpop.xlane.xlu0 %368 }
 0x4be   :  { %v370_v13 = vcvt.f32.s32 %v369_v9 }
 0x4c0   :  { %v889_v14 = vadd.s32 %v372_v10, %v370_v13 }
 0x4c1   :  { %v383_v15 = vpop.xlane.xlu1 %382  ;;  %v397_v18 = vpop.xlane.xlu0 %396 }
 0x4c2   :  { %v384_v19 = vcvt.f32.s32 %v383_v15  ;;  %v398_v24 = vcvt.f32.s32 %v397_v18  ;;  %vm416_vm5 = vcmp.eq.s32.totalorder %v803_v37, %v889_v14 }
 0x4c3   :  { %v899_v31 = vsel %vm416_vm5, -1e+30, %v835_v21 }
 0x4c4   :  { %v893_v25 = vadd.s32 %v386_v16, %v384_v19  ;;  %v901_v39 = vadd.s32 %v400_v23, %v398_v24  ;;  %448 = vmax.xlane.f32.xlu0 %v899_v31 }
 0x4c5   :  { %v411_v43 = vpop.xlane.xlu1 %410 }
 0x4c6   :  { %v412_v45 = vcvt.f32.s32 %v411_v43  ;;  %vm417_vm6 = vcmp.eq.s32.totalorder %v803_v37, %v893_v25  ;;  %vm418_vm7 = vcmp.eq.s32.totalorder %v803_v37, %v901_v39 }
 0x4c7   :  { %v912_v46 = vsel %vm417_vm6, -1e+30, %v848_v26  ;;  %v920_v49 = vsel %vm418_vm7, -1e+30, %v856_v28 }
 0x4c8   :  { %v914_v21 = vadd.s32 %v414_v44, %v412_v45  ;;  %450 = vmax.xlane.f32.xlu1 %v912_v46  ;;  %452 = vmax.xlane.f32.xlu0 %v920_v49 }
 0x4ca   :  { %vm419_vm8 = vcmp.eq.s32.totalorder %v803_v37, %v914_v21 }
 0x4cb   :  { %v930_v26 = vsel %vm419_vm8, -1e+30, %v866_v29 }
 0x4cc   :  { %454 = vmax.xlane.f32.xlu1 %v930_v26 }
 0x54d   :  { %v933_v50 = vpop.xlane.xlu0 %448 }
 0x54e   :  { %vm456_vm13 = vcmp.ge.f32.partialorder %v899_v31, %v933_v50 }
 0x54f   :  { %v460_v28 = vsel %vm456_vm13, %v803_v37, 128 }
 0x550   :  { %v465_v52 = vshra.s32 %v460_v28, 16  ;;  %v464_v0 = vand.u32 65535, %v460_v28 }
 0x551   :  { %v938_v51 = vpop.xlane.xlu1 %450  ;;  %v940_v53 = vpop.xlane.xlu0 %452 }
 0x552   :  { %vm457_vm14 = vcmp.ge.f32.partialorder %v912_v46, %v938_v51  ;;  %vm458_vm15 = vcmp.ge.f32.partialorder %v920_v49, %v940_v53  ;;  %v467_v54 = vcvt.s32.f32 %v465_v52  ;;  %v466_v3 = vcvt.s32.f32 %v464_v0 }
 0x553   :  { %v461_v29 = vsel %vm457_vm14, %v803_v37, 128  ;;  %v462_v55 = vsel %vm458_vm15, %v803_v37, 128 }
 0x554   :  { %v479_v56 = vshra.s32 %v461_v29, 16  ;;  %468 = vmin.xlane.f32.xlu0 %v467_v54  ;;  %v493_v58 = vshra.s32 %v462_v55, 16  ;;  %v478_v1 = vand.u32 65535, %v461_v29  ;;  %v492_v4 = vand.u32 65535, %v462_v55 }
 0x555   :  { %v948_v57 = vpop.xlane.xlu1 %454 }
 0x556   :  { %vm459_vm0 = vcmp.ge.f32.partialorder %v930_v26, %v948_v57  ;;  %v481_v59 = vcvt.s32.f32 %v479_v56  ;;  %v495_v61 = vcvt.s32.f32 %v493_v58  ;;  %v480_v7 = vcvt.s32.f32 %v478_v1 }
 0x557   :  { %v463_v60 = vsel %vm459_vm0, %v803_v37, 128  ;;  %v494_v10 = vcvt.s32.f32 %v492_v4  ;;  %v731_v4 = vmov 0  }
 0x558   :  { %482 = vmin.xlane.f32.xlu1 %v481_v59  ;;  %v507_v62 = vshra.s32 %v463_v60, 16  ;;  %496 = vmin.xlane.f32.xlu0 %v495_v61  ;;  %v506_v8 = vand.u32 65535, %v463_v60 }
 0x559   :  { %720 = vset.pattern.permute.xlu1 %v731_v4  ;;  %719 = vset.pattern.permute.xlu0 %v731_v4 }
 0x55a   :  { %v509_v63 = vcvt.s32.f32 %v507_v62  ;;  %v508_v16 = vcvt.s32.f32 %v506_v8 }
 0x55c   :  { %510 = vmin.xlane.f32.xlu1 %v509_v63 }
 0x5dd   :  { %v469_v2 = vpop.xlane.xlu0 %468 }
 0x5de   :  { %vm470_vm1 = vcmp.eq.f32.partialorder %v467_v54, %v469_v2  ;;  %v475_v18 = vcvt.f32.s32 %v469_v2 }
 0x5df   :  { %v471_v5 = vsel %vm470_vm1, %v466_v3, inf }
 0x5e0   :  { %472 = vmin.xlane.f32.xlu0 %v471_v5  ;;  %v476_v24 = vshll.u32 %v475_v18, 16 }
 0x5e1   :  { %v483_v6 = vpop.xlane.xlu1 %482  ;;  %v497_v9 = vpop.xlane.xlu0 %496 }
 0x5e2   :  { %vm484_vm2 = vcmp.eq.f32.partialorder %v481_v59, %v483_v6  ;;  %vm498_vm3 = vcmp.eq.f32.partialorder %v495_v61, %v497_v9  ;;  %v489_v19 = vcvt.f32.s32 %v483_v6  ;;  %v503_v43 = vcvt.f32.s32 %v497_v9 }
 0x5e3   :  { %v485_v11 = vsel %vm484_vm2, %v480_v7, inf  ;;  %v499_v13 = vsel %vm498_vm3, %v494_v10, inf }
 0x5e4   :  { %486 = vmin.xlane.f32.xlu1 %v485_v11  ;;  %500 = vmin.xlane.f32.xlu0 %v499_v13  ;;  %v490_v52 = vshll.u32 %v489_v19, 16  ;;  %v504_v56 = vshll.u32 %v503_v43, 16  ;;  %v133_v43 = vld [vmem:[%s1235_s3 + $0x18] sm:$0xff] }
 0x5e5   :  { %v511_v15 = vpop.xlane.xlu1 %510 }
 0x5e6   :  { %vm512_vm4 = vcmp.eq.f32.partialorder %v509_v63, %v511_v15  ;;  %v517_v29 = vcvt.f32.s32 %v511_v15 }
 0x5e7   :  { %v513_v17 = vsel %vm512_vm4, %v508_v16, inf }
 0x5e8   :  { %514 = vmin.xlane.f32.xlu1 %v513_v17  ;;  %v518_v63 = vshll.u32 %v517_v29, 16 }
 0x669   :  { %v473_v23 = vpop.xlane.xlu0 %472 }
 0x66a   :  { %v474_v44 = vcvt.f32.s32 %v473_v23  ;;  %v131_v23 = vld [vmem:[%s1235_s3 + $0x8] sm:$0xff] }
 0x66c   :  { %v953_v45 = vadd.s32 %v476_v24, %v474_v44  ;;  %v132_v24 = vld [vmem:[%s1235_s3 + $0x10] sm:$0xff]  ;;  %v1013_v44 = vld [vmem:[%s1236_s4] sm:$0xff] }
 0x66d   :  { %v487_v28 = vpop.xlane.xlu1 %486  ;;  %v501_v54 = vpop.xlane.xlu0 %500 }
 0x66e   :  { %v488_v55 = vcvt.f32.s32 %v487_v28  ;;  %v502_v58 = vcvt.f32.s32 %v501_v54  ;;  %vm520_vm13 = vcmp.eq.s32.totalorder %v803_v37, %v953_v45  ;;  %v1019_v28 = vld [vmem:[%s1236_s4 + $0x8] sm:$0xff] }
 0x66f   :  { %v548_v60 = vsel %vm520_vm13, -1e+30, %v899_v31 }
 0x670   :  { %v957_v59 = vadd.s32 %v490_v52, %v488_v55  ;;  %v963_v61 = vadd.s32 %v504_v56, %v502_v58  ;;  %552 = vmax.xlane.f32.xlu0 %v548_v60  ;;  %v1025_v52 = vld [vmem:[%s1236_s4 + $0x10] sm:$0xff] }
 0x671   :  { %v515_v62 = vpop.xlane.xlu1 %514 }
 0x672   :  { %v516_v0 = vcvt.f32.s32 %v515_v62  ;;  %vm521_vm14 = vcmp.eq.s32.totalorder %v803_v37, %v957_v59  ;;  %vm522_vm15 = vcmp.eq.s32.totalorder %v803_v37, %v963_v61 }
 0x673   :  { %v549_v1 = vsel %vm521_vm14, -1e+30, %v912_v46  ;;  %v550_v31 = vsel %vm522_vm15, -1e+30, %v920_v49 }
 0x674   :  { %v973_v2 = vadd.s32 %v518_v63, %v516_v0  ;;  %554 = vmax.xlane.f32.xlu1 %v549_v1  ;;  %556 = vmax.xlane.f32.xlu0 %v550_v31 }
 0x676   :  { %vm523_vm0 = vcmp.eq.s32.totalorder %v803_v37, %v973_v2 }
 0x677   :  { %v551_v3 = vsel %vm523_vm0, -1e+30, %v930_v26 }
 0x678   :  { %558 = vmax.xlane.f32.xlu1 %v551_v3 }
 0x6f9   :  { %v985_v46 = vpop.xlane.xlu0 %552 }
 0x6fa   :  { %vm560_vm1 = vcmp.ge.f32.partialorder %v548_v60, %v985_v46 }
 0x6fb   :  { %v564_v49 = vsel %vm560_vm1, %v803_v37, 128 }
 0x6fc   :  { %v569_v6 = vshra.s32 %v564_v49, 16  ;;  %v568_v60 = vand.u32 65535, %v564_v49 }
 0x6fd   :  { %v989_v5 = vpop.xlane.xlu1 %554  ;;  %v991_v7 = vpop.xlane.xlu0 %556 }
 0x6fe   :  { %vm562_vm2 = vcmp.ge.f32.partialorder %v550_v31, %v991_v7  ;;  %v571_v8 = vcvt.s32.f32 %v569_v6  ;;  %vm561_vm3 = vcmp.ge.f32.partialorder %v549_v1, %v989_v5  ;;  %v570_v31 = vcvt.s32.f32 %v568_v60 }
 0x6ff   :  { %v566_v26 = vsel %vm562_vm2, %v803_v37, 128  ;;  %v565_v11 = vsel %vm561_vm3, %v803_v37, 128 }
 0x700   :  { %572 = vmin.xlane.f32.xlu0 %v571_v8  ;;  %v597_v10 = vshra.s32 %v566_v26, 16  ;;  %v583_v18 = vshra.s32 %v565_v11, 16  ;;  %v596_v54 = vand.u32 65535, %v566_v26  ;;  %v582_v1 = vand.u32 65535, %v565_v11 }
 0x701   :  { %v996_v9 = vpop.xlane.xlu1 %558 }
 0x702   :  { %vm563_vm4 = vcmp.ge.f32.partialorder %v551_v3, %v996_v9  ;;  %v599_v15 = vcvt.s32.f32 %v597_v10  ;;  %v585_v19 = vcvt.s32.f32 %v583_v18  ;;  %v598_v58 = vcvt.s32.f32 %v596_v54  ;;  %v130_v10 = vld [vmem:[%s1235_s3] sm:$0xff] }
 0x703   :  { %v567_v13 = vsel %vm563_vm4, %v803_v37, 128  ;;  %v584_v49 = vcvt.s32.f32 %v582_v1 }
 0x704   :  { %v611_v16 = vshra.s32 %v567_v13, 16  ;;  %600 = vmin.xlane.f32.xlu0 %v599_v15  ;;  %v610_v55 = vand.u32 65535, %v567_v13  ;;  %v1052_v13 = vld [vmem:[%s1237_s2] ss:$0 sm:$0xff] }
 0x705   :  { %v288_v21 = vsel %vm268_vm9, %v1052_v13, 0  ;;  %v290_v20 = vsel %vm270_vm11, %v1052_v13, 0 }
 0x706   :  { %v613_v17 = vcvt.s32.f32 %v611_v16  ;;  %v612_v0 = vcvt.s32.f32 %v610_v55 }
 0x708   :  { %614 = vmin.xlane.f32.xlu1 %v613_v17 }
 0x70c   :  { %586 = vmin.xlane.f32.xlu1 %v585_v19 }
 0x71d   :  { %148 = vperm.xlu1 %720, %v131_v23  }
 0x721   :  { %151 = vperm.xlu1 %720, %v132_v24  }
 0x725   :  { %154 = vperm.xlu1 %720, %v133_v43  }
 0x729   :  { %169 = vperm.xlu1 %720, %v1013_v44  }
 0x72d   :  { %172 = vperm.xlu1 %720, %v1019_v28  }
 0x731   :  { %175 = vperm.xlu1 %720, %v1025_v52  }
 0x789   :  { %v1028_v29 = vpop.xlane.xlu0 %572 }
 0x78a   :  { %vm574_vm2 = vcmp.eq.f32.partialorder %v571_v8, %v1028_v29  ;;  %v1043_v8 = vld [vmem:[%s1236_s4 + $0x18] sm:$0xff]  ;;  %v579_v59 = vcvt.f32.s32 %v1028_v29 }
 0x78b   :  { %v575_v4 = vsel %vm574_vm2, %v570_v31, inf }
 0x78c   :  { %v580_v2 = vshll.u32 %v579_v59, 16 }
 0x78d   :  { %v1030_v56 = vpop.xlane.xlu0 %600 }
 0x78e   :  { %vm602_vm1 = vcmp.eq.f32.partialorder %v599_v15, %v1030_v56  ;;  %v607_v25 = vcvt.f32.s32 %v1030_v56  ;;  %v293_v56 = vshrl.u32 %v288_v21, 16 }
 0x78f   :  { %v603_v62 = vsel %vm602_vm1, %v598_v58, inf }
 0x790   :  { %604 = vmin.xlane.f32.xlu0 %v603_v62 }
 0x791   :  { %v1033_v63 = vpop.xlane.xlu1 %614 }
 0x792   :  { %vm616_vm3 = vcmp.eq.f32.partialorder %v613_v17, %v1033_v63 }
 0x793   :  { %v617_v3 = vsel %vm616_vm3, %v612_v0, inf }
 0x794   :  { %618 = vmin.xlane.f32.xlu1 %v617_v3  ;;  %576 = vmin.xlane.f32.xlu0 %v575_v4 }
 0x795   :  { %v1037_v6 = vpop.xlane.xlu1 %586 }
 0x796   :  { %vm588_vm4 = vcmp.eq.f32.partialorder %v585_v19, %v1037_v6 }
 0x797   :  { %v589_v26 = vsel %vm588_vm4, %v584_v49, inf }
 0x798   :  { %590 = vmin.xlane.f32.xlu1 %v589_v26 }
 0x799   :  { %v149_v11 = vpop.permute.xlu1 %148 }
 0x79a   :  { %vm157_vm1 = vcmp.eq.s32.totalorder %v1052_v13, %v149_v11 }
 0x79b   :  { %v1056_v16 = vsel %vm157_vm1, %v798_v35, 0.0  ;;  %vm165_vm1 = vcmp.lt.s32.totalorder %v1019_v28, 128 }
 0x79c   :  { %v273_v17 = vsel %vm269_vm10, %v1056_v16, 0.0  ;;  %v421_v49 = vsel %vm417_vm6, %v1056_v16, 0.0  ;;  %v525_v61 = vsel %vm521_vm14, %v1056_v16, 0.0  ;;  %vm684_vm14 = vcmask 7168  }
 0x79d   :  { %v152_v15 = vpop.permute.xlu1 %151 }
 0x79e   :  { %vm158_vm2 = vcmp.eq.s32.totalorder %v1052_v13, %v152_v15 }
 0x79f   :  { %v1064_v18 = vsel %vm158_vm2, %v791_v32, 0.0 }
 0x7a0   :  { %v274_v19 = vsel %vm270_vm11, %v1064_v18, 0.0  ;;  %v422_v31 = vsel %vm418_vm7, %v1064_v18, 0.0  ;;  %v526_v26 = vsel %vm522_vm15, %v1064_v18, 0.0  ;;  %vm164_vm15 = vcmp.lt.s32.totalorder %v1013_v44, 128 }
 0x7a1   :  { %v155_v24 = vpop.permute.xlu1 %154 }
 0x7a2   :  { %vm159_vm3 = vcmp.eq.s32.totalorder %v1052_v13, %v155_v24 }
 0x7a3   :  { %v1084_v1 = vsel %vm159_vm3, %v796_v34, 0.0 }
 0x7a4   :  { %v275_v14 = vsel %vm271_vm12, %v1084_v1, 0.0 }
 0x7a5   :  { %v170_v54 = vpop.permute.xlu1 %169 }
 0x7a9   :  { %178 = vperm.xlu1 %720, %v1043_v8   ;;  %v173_v60 = vpop.permute.xlu1 %172 }
 0x7aa   :  { %145 = vperm.xlu0 %719, %v130_v10   ;;  %v423_v10 = vsel %vm419_vm8, %v1084_v1, 0.0  ;;  %vm181_vm7 = vcmp.eq.s32.totalorder %v803_v37, %v173_v60 }
 0x7ad   :  { %v176_v3 = vpop.permute.xlu1 %175 }
 0x7ae   :  { %vm182_vm6 = vcmp.eq.s32.totalorder %v803_v37, %v176_v3 }
 0x7c9   :  { %278 = vadd.xlane.f32.xlu0 %v273_v17  ;;  %v608_v17 = vshll.u32 %v607_v25, 16 }
 0x7cd   :  { %280 = vadd.xlane.f32.xlu0 %v274_v19  ;;  %v186_v19 = vsel %vm182_vm6, %v791_v32, 0.0  ;;  %v289_v32 = vsel %vm269_vm10, %v1052_v13, 0 }
 0x7ce   :  { %v305_v60 = vshrl.u32 %v289_v32, 16 }
 0x819   :  { %v605_v23 = vpop.xlane.xlu0 %604 }
 0x81a   :  { %v606_v15 = vcvt.f32.s32 %v605_v23  ;;  %v621_v23 = vcvt.f32.s32 %v1033_v63  ;;  %v593_v63 = vcvt.f32.s32 %v1037_v6  ;;  %v317_v6 = vshrl.u32 %v290_v20, 16 }
 0x81c   :  { %v609_v12 = vadd.s32 %v608_v17, %v606_v15  ;;  %v622_v29 = vshll.u32 %v621_v23, 16  ;;  %v304_v15 = vand.u32 65535, %v289_v32 }
 0x81d   :  { %v577_v43 = vpop.xlane.xlu0 %576  ;;  %v619_v39 = vpop.xlane.xlu1 %618 }
 0x81e   :  { %vm626_vm8 = vcmp.eq.s32.totalorder %v803_v37, %v609_v12 }
 0x821   :  { %v591_v45 = vpop.xlane.xlu1 %590 }
 0x822   :  { %v592_v3 = vcvt.f32.s32 %v591_v45 }
 0x825   :  { %v146_v55 = vpop.permute.xlu0 %145  ;;  %v179_v24 = vpop.permute.xlu1 %178 }
 0x826   :  { %vm156_vm4 = vcmp.eq.s32.totalorder %v1052_v13, %v146_v55  ;;  %v295_v55 = vcvt.s32.f32 %v293_v56 }
 0x827   :  { %v1073_v58 = vsel %vm156_vm4, %v793_v33, 0.0 }
 0x828   :  { %v420_v62 = vsel %vm416_vm5, %v1073_v58, 0.0  ;;  %v272_v0 = vsel %vm268_vm9, %v1073_v58, 0.0  ;;  %v524_v4 = vsel %vm520_vm13, %v1073_v58, 0.0  ;;  %vm180_vm5 = vcmp.eq.s32.totalorder %v803_v37, %v170_v54 }
 0x829   :  { %424 = vadd.xlane.f32.xlu0 %v420_v62  ;;  %276 = vadd.xlane.f32.xlu1 %v272_v0  ;;  %v184_v11 = vsel %vm180_vm5, %v793_v33, 0.0  ;;  %v527_v33 = vsel %vm523_vm0, %v1084_v1, 0.0  ;;  %v578_v54 = vcvt.f32.s32 %v577_v43  ;;  %v185_v62 = vsel %vm181_vm7, %v798_v35, 0.0 }
 0x82a   :  { %v620_v0 = vcvt.f32.s32 %v619_v39  ;;  %vm183_vm9 = vcmp.eq.s32.totalorder %v803_v37, %v179_v24  ;;  %v630_v35 = vsel %vm626_vm8, %v1064_v18, 0.0  ;;  %v292_v18 = vand.u32 65535, %v288_v21 }
 0x82b   :  { %v581_v43 = vadd.s32 %v580_v2, %v578_v54  ;;  %vm167_vm0 = vcmp.lt.s32.totalorder %v1043_v8, 128 }
 0x82c   :  { %v294_v25 = vcvt.s32.f32 %v292_v18 }
 0x82d   :  { %428 = vadd.xlane.f32.xlu0 %v422_v31  ;;  %282 = vadd.xlane.f32.xlu1 %v275_v14  ;;  %v187_v31 = vsel %vm183_vm9, %v796_v34, 0.0  ;;  %v623_v14 = vadd.s32 %v622_v29, %v620_v0  ;;  %vm624_vm10 = vcmp.eq.s32.totalorder %v803_v37, %v581_v43  ;;  %v319_v34 = vcvt.s32.f32 %v317_v6 }
 0x82e   :  { %v628_v39 = vsel %vm624_vm10, %v1073_v58, 0.0  ;;  %v316_v58 = vand.u32 65535, %v290_v20 }
 0x82f   :  { %vm627_vm13 = vcmp.eq.s32.totalorder %v803_v37, %v623_v14 }
 0x830   :  { %v631_v22 = vsel %vm627_vm13, %v1084_v1, 0.0  ;;  %v306_v1 = vcvt.s32.f32 %v304_v15 }
 0x831   :  { %528 = vadd.xlane.f32.xlu0 %v524_v4  ;;  %426 = vadd.xlane.f32.xlu1 %v421_v49  ;;  %v594_v4 = vshll.u32 %v593_v63, 16  ;;  %v307_v49 = vcvt.s32.f32 %v305_v60 }
 0x835   :  { %532 = vadd.xlane.f32.xlu0 %v526_v26  ;;  %430 = vadd.xlane.f32.xlu1 %v423_v10  ;;  %v595_v26 = vadd.s32 %v594_v4, %v592_v3  ;;  %v291_v10 = vsel %vm271_vm12, %v1052_v13, 0  ;;  %vm166_vm12 = vcmp.lt.s32.totalorder %v1025_v52, 128 }
 0x836   :  { %v329_v45 = vshrl.u32 %v291_v10, 16  ;;  %v328_v17 = vand.u32 65535, %v291_v10 }
 0x837   :  { %vm625_vm11 = vcmp.eq.s32.totalorder %v803_v37, %v595_v26 }
 0x838   :  { %v331_v21 = vcvt.s32.f32 %v329_v45  ;;  %v330_v27 = vcvt.s32.f32 %v328_v17 }
 0x839   :  { %188 = vadd.xlane.f32.xlu0 %v184_v11  ;;  %530 = vadd.xlane.f32.xlu1 %v525_v61  ;;  %v629_v11 = vsel %vm625_vm11, %v1056_v16, 0.0  ;;  %v318_v61 = vcvt.s32.f32 %v316_v58 }
 0x83d   :  { %192 = vadd.xlane.f32.xlu0 %v186_v19  ;;  %534 = vadd.xlane.f32.xlu1 %v527_v33 }
 0x841   :  { %298 = vadd.xlane.f32.xlu0 %v295_v55  ;;  %190 = vadd.xlane.f32.xlu1 %v185_v62 }
 0x845   :  { %636 = vadd.xlane.f32.xlu0 %v630_v35  ;;  %194 = vadd.xlane.f32.xlu1 %v187_v31 }
 0x849   :  { %632 = vadd.xlane.f32.xlu0 %v628_v39  ;;  %310 = vadd.xlane.f32.xlu1 %v307_v49 }
 0x84d   :  { %322 = vadd.xlane.f32.xlu0 %v319_v34  ;;  %638 = vadd.xlane.f32.xlu1 %v631_v22  ;;  %v1170_v34 = vadd.f32 0.1, %v805_v38 }
 0x851   :  { %296 = vadd.xlane.f32.xlu0 %v294_v25  ;;  %634 = vadd.xlane.f32.xlu1 %v629_v11 }
 0x852   :  { %v1154_v13 = vpop.xlane.xlu0 %278 }
 0x855   :  { %320 = vadd.xlane.f32.xlu0 %v318_v61  ;;  %334 = vadd.xlane.f32.xlu1 %v331_v21 }
 0x856   :  { %v281_v37 = vpop.xlane.xlu0 %280 }
 0x857   :  { %v286_v63 = vsub.f32 %v810_v41, %v281_v37 }
 0x859   :  { %308 = vadd.xlane.f32.xlu1 %v306_v1 }
 0x85d   :  { %332 = vadd.xlane.f32.xlu1 %v330_v27 }
 0x8b2   :  { %v425_v56 = vpop.xlane.xlu0 %424  ;;  %v277_v19 = vpop.xlane.xlu1 %276 }
 0x8b3   :  { %v432_v35 = vsub.f32 %v869_v30, %v425_v56  ;;  %v284_v31 = vsub.f32 %v805_v38, %v277_v19  ;;  %v436_v6 = vmax.f32 %v277_v19, %v425_v56 }
 0x8b5   :  { %v440_v18 = vmax.f32 %v284_v31, %v432_v35 }
 0x8b6   :  { %v429_v33 = vpop.xlane.xlu0 %428  ;;  %v283_v59 = vpop.xlane.xlu1 %282 }
 0x8b7   :  { %v434_v2 = vsub.f32 %v876_v40, %v429_v33  ;;  %v438_v43 = vmax.f32 %v281_v37, %v429_v33  ;;  %v287_v25 = vsub.f32 %v820_v48, %v283_v59  ;;  %v285_v37 = vsub.f32 %v812_v42, %v1154_v13 }
 0x8b9   :  { %v442_v20 = vmax.f32 %v286_v63, %v434_v2 }
 0x8ba   :  { %v529_v16 = vpop.xlane.xlu0 %528  ;;  %v1156_v12 = vpop.xlane.xlu1 %426 }
 0x8bb   :  { %v536_v3 = vsub.f32 %v933_v50, %v529_v16  ;;  %v540_v22 = vmax.f32 %v436_v6, %v529_v16  ;;  %v433_v17 = vsub.f32 %v874_v36, %v1156_v12 }
 0x8bd   :  { %v544_v50 = vmax.f32 %v440_v18, %v536_v3 }
 0x8be   :  { %v533_v24 = vpop.xlane.xlu0 %532  ;;  %v431_v23 = vpop.xlane.xlu1 %430 }
 0x8bf   :  { %v538_v60 = vsub.f32 %v940_v53, %v533_v24  ;;  %v542_v14 = vmax.f32 %v438_v43, %v533_v24  ;;  %v674_v53 = vadd.f32 0.1, %v810_v41  ;;  %v435_v30 = vsub.f32 %v884_v47, %v431_v23 }
 0x8c0   :  { %v676_v41 = vmax.f32 %v1170_v34, 0.0  ;;  %v439_v1 = vmax.f32 %v283_v59, %v431_v23  ;;  %v437_v23 = vmax.f32 %v1154_v13, %v1156_v12  ;;  %v441_v43 = vmax.f32 %v285_v37, %v433_v17 }
 0x8c1   :  { %v546_v40 = vmax.f32 %v442_v20, %v538_v60  ;;  %v678_v15 = vmax.f32 %v674_v53, 0.0  ;;  %v443_v47 = vmax.f32 %v287_v25, %v435_v30 }
 0x8c2   :  { %v189_v54 = vpop.xlane.xlu0 %188  ;;  %v1158_v55 = vpop.xlane.xlu1 %530 }
 0x8c3   :  { %v537_v36 = vsub.f32 %v938_v51, %v1158_v55 }
 0x8c5   :  { %v545_v51 = vmax.f32 %v441_v43, %v537_v36 }
 0x8c6   :  { %v193_v62 = vpop.xlane.xlu0 %192  ;;  %v535_v32 = vpop.xlane.xlu1 %534 }
 0x8c7   :  { %v539_v58 = vsub.f32 %v948_v57, %v535_v32  ;;  %v543_v56 = vmax.f32 %v439_v1, %v535_v32 }
 0x8c9   :  { %v547_v19 = vmax.f32 %v443_v47, %v539_v58 }
 0x8ca   :  { %v299_v0 = vpop.xlane.xlu0 %298  ;;  %v1161_v29 = vpop.xlane.xlu1 %190 }
 0x8cb   :  { %v301_v33 = vcvt.f32.s32 %v299_v0  ;;  %v541_v0 = vmax.f32 %v437_v23, %v1158_v55 }
 0x8cd   :  { %v302_v31 = vshll.u32 %v301_v33, 16 }
 0x8ce   :  { %v637_v4 = vpop.xlane.xlu0 %636  ;;  %v195_v49 = vpop.xlane.xlu1 %194 }
 0x8cf   :  { %v642_v39 = vsub.f32 %v991_v7, %v637_v4  ;;  %v646_v26 = vmax.f32 %v542_v14, %v637_v4 }
 0x8d1   :  { %v650_v10 = vmax.f32 %v546_v40, %v642_v39  ;;  %v654_v7 = vmax.f32 %v646_v26, %v193_v62 }
 0x8d2   :  { %v633_v45 = vpop.xlane.xlu0 %632  ;;  %v1176_v11 = vpop.xlane.xlu1 %310 }
 0x8d3   :  { %v658_v61 = vmax.f32 %v650_v10, 0.0  ;;  %v640_v38 = vsub.f32 %v985_v46, %v633_v45  ;;  %v644_v21 = vmax.f32 %v540_v22, %v633_v45  ;;  %v313_v26 = vcvt.f32.s32 %v1176_v11 }
 0x8d4   :  { %v673_v45 = vadd.f32 0.1, %v812_v42 }
 0x8d5   :  { %v662_v27 = vsub.f32 %v658_v61, %v654_v7  ;;  %v648_v57 = vmax.f32 %v544_v50, %v640_v38  ;;  %v652_v62 = vmax.f32 %v644_v21, %v189_v54  ;;  %v314_v61 = vshll.u32 %v313_v26, 16 }
 0x8d6   :  { %v323_v46 = vpop.xlane.xlu0 %322  ;;  %v639_v16 = vpop.xlane.xlu1 %638 }
 0x8d7   :  { %v666_v24 = vadd.f32 0.1, %v662_v27  ;;  %v656_v2 = vmax.f32 %v648_v57, 0.0  ;;  %v643_v59 = vsub.f32 %v996_v9, %v639_v16  ;;  %v647_v63 = vmax.f32 %v543_v56, %v639_v16 }
 0x8d8   :  { %v325_v20 = vcvt.f32.s32 %v323_v46 }
 0x8d9   :  { %v670_v60 = vmax.f32 %v666_v24, 0.0  ;;  %v660_v32 = vsub.f32 %v656_v2, %v652_v62  ;;  %v651_v35 = vmax.f32 %v547_v19, %v643_v59  ;;  %v655_v54 = vmax.f32 %v647_v63, %v195_v49 }
 0x8da   :  { %v297_v14 = vpop.xlane.xlu0 %296  ;;  %v635_v3 = vpop.xlane.xlu1 %634  ;;  %v675_v49 = vadd.f32 0.1, %v820_v48  ;;  %v326_v30 = vshll.u32 %v325_v20, 16 }
 0x8db   :  { %v682_v9 = vsel %vm166_vm12, %v670_v60, %v678_v15  ;;  %v664_v13 = vadd.f32 0.1, %v660_v32  ;;  %v659_v12 = vmax.f32 %v651_v35, 0.0  ;;  %v300_v4 = vcvt.f32.s32 %v297_v14 }
 0x8dc   :  { %687 = vst.msk [vmem:[%s1238_s5 + $0x10] sm:$0xff] %vm684_vm14, %v682_v9  ;;  %v641_v55 = vsub.f32 %v989_v5, %v635_v3  ;;  %v645_v6 = vmax.f32 %v541_v0, %v635_v3  ;;  %v679_v25 = vmax.f32 %v675_v49, 0.0 }
 0x8dd   :  { %v668_v40 = vmax.f32 %v664_v13, 0.0  ;;  %v663_v39 = vsub.f32 %v659_v12, %v655_v54  ;;  %v303_v52 = vadd.s32 %v302_v31, %v300_v4 }
 0x8de   :  { %v649_v34 = vmax.f32 %v545_v51, %v641_v55  ;;  %v321_v53 = vpop.xlane.xlu0 %320  ;;  %v335_v18 = vpop.xlane.xlu1 %334  ;;  %v653_v48 = vmax.f32 %v645_v6, %v1161_v29 }
 0x8df   :  { %v680_v44 = vsel %vm164_vm15, %v668_v40, %v676_v41  ;;  %v667_v22 = vadd.f32 0.1, %v663_v39  ;;  %689 = vst.msk [vmem:[%s1239_s6] sm:$0xff] %vm684_vm14, %v303_v52  ;;  %v324_v5 = vcvt.f32.s32 %v321_v53  ;;  %v337_v8 = vcvt.f32.s32 %v335_v18 }
 0x8e0   :  { %685 = vst.msk [vmem:[%s1238_s5] sm:$0xff] %vm684_vm14, %v680_v44  ;;  %v657_v10 = vmax.f32 %v649_v34, 0.0  ;;  %v677_v41 = vmax.f32 %v673_v45, 0.0 }
 0x8e1   :  { %v671_v50 = vmax.f32 %v667_v22, 0.0  ;;  %v327_v58 = vadd.s32 %v326_v30, %v324_v5  ;;  %v338_v47 = vshll.u32 %v337_v8, 16 }
 0x8e2   :  { %v661_v11 = vsub.f32 %v657_v10, %v653_v48  ;;  %v309_v7 = vpop.xlane.xlu1 %308 }
 0x8e3   :  { %v683_v38 = vsel %vm167_vm0, %v671_v50, %v679_v25  ;;  %691 = vst.msk [vmem:[%s1239_s6 + $0x10] sm:$0xff] %vm684_vm14, %v327_v58  ;;  %v312_v21 = vcvt.f32.s32 %v309_v7 }
 0x8e4   :  { %688 = vst.msk [vmem:[%s1238_s5 + $0x18] sm:$0xff] %vm684_vm14, %v683_v38  ;;  %v665_v29 = vadd.f32 0.1, %v661_v11 }
 0x8e5   :  { %v315_v42 = vadd.s32 %v314_v61, %v312_v21 }
 0x8e6   :  { %v669_v15 = vmax.f32 %v665_v29, 0.0  ;;  %v333_v1 = vpop.xlane.xlu1 %332 }
 0x8e7   :  { %690 = vst.msk [vmem:[%s1239_s6 + $0x8] sm:$0xff] %vm684_vm14, %v315_v42  ;;  %v336_v17 = vcvt.f32.s32 %v333_v1 }
 0x8e8   :  { %v681_v27 = vsel %vm165_vm1, %v669_v15, %v677_v41 }
 0x8e9   :  { %686 = vst.msk [vmem:[%s1238_s5 + $0x8] sm:$0xff] %vm684_vm14, %v681_v27  ;;  %v339_v57 = vadd.s32 %v338_v47, %v336_v17 }
 0x8eb   :  { %692 = vst.msk [vmem:[%s1239_s6 + $0x18] sm:$0xff] %vm684_vm14, %v339_v57 }

</bundles_post_ra>
